<compile_context>
chip_gen: v7x
topology: tpu7x:2x2x1
jax: 0.10.0
libtpu: 0.0.40
codegen_flags: <defaults>
</compile_context>

<pallas_src>
import functools

import jax
import jax.numpy as jnp
from jax.experimental import pallas as pl
from jax.experimental.pallas import tpu as pltpu


def _channel_attention_kernel(x_ref, w1t_ref, w2t_ref, o_ref, acc_ref, *, inv_hw):
    # x_ref : (bn, C, thw)   w1t_ref : (C, Ch)   w2t_ref : (Ch, C)
    # o_ref : (bn, C)        acc_ref : (bn, C) f32 scratch (running spatial sum)
    k = pl.program_id(1)

    @pl.when(k == 0)
    def _():
        acc_ref[...] = jnp.zeros_like(acc_ref)

    # Streaming partial spatial sum (cross-lane reduce lands on the XLU slot,
    # free relative to the DMA-bound streaming loop).
    acc_ref[...] += jnp.sum(x_ref[...].astype(jnp.float32), axis=-1)

    @pl.when(k == pl.num_programs(1) - 1)
    def _():
        # Epilogue: mean scale + fc1/ReLU/fc2/sigmoid, store once per N-tile.
        pooled = acc_ref[...] * inv_hw                                    # (bn, C)
        h = jnp.dot(pooled, w1t_ref[...].astype(jnp.float32),
                    preferred_element_type=jnp.float32)                   # (bn, Ch)
        h = jnp.maximum(h, 0.0)
        out = jnp.dot(h, w2t_ref[...].astype(jnp.float32),
                      preferred_element_type=jnp.float32)                 # (bn, C)
        o_ref[...] = jax.nn.sigmoid(out).astype(o_ref.dtype)


def _pick_batch_tile(N):
    # The output block is (bn, C); its second-to-last dim must be a multiple
    # of 8 or the full batch extent.
    for cand in (32, 16, 8):
        if N % cand == 0:
            return cand
    return N


def channel_attention(x, w_fc1, w_fc2, *, max_tile_bytes=8 * 1024 * 1024):
    """x: (N, C, H, W); w_fc1: (C//ratio, C); w_fc2: (C, C//ratio).

    Returns (N, C, 1, 1), matching PyTorch's ChannelAttention.forward output.
    """
    N, C, H, W = x.shape
    Ch = w_fc1.shape[0]
    HW = H * W

    x_flat = x.reshape(N, C, HW)

    # Pad the spatial axis to a multiple of 128 so the lane dim of the block
    # satisfies the (8, 128) constraint; zeros do not change the running sum.
    HW_pad = ((HW + 127) // 128) * 128
    if HW_pad != HW:
        x_flat = jnp.pad(x_flat, ((0, 0), (0, 0), (0, HW_pad - HW)))

    dtype_bytes = jnp.dtype(x.dtype).itemsize
    bn = _pick_batch_tile(N)

    # Spatial tile: a multiple of 128 dividing HW_pad, sized so a single input
    # buffer stays within the VMEM budget (BlockSpec double-buffers it).
    max_thw = max(128, (max_tile_bytes // max(1, bn * C * dtype_bytes)) // 128 * 128)
    thw = min(HW_pad, max_thw)
    while HW_pad % thw != 0:
        thw -= 128

    grid = (N // bn, HW_pad // thw)

    # Pre-transpose the weights on the host side (one-time XLA op) so the
    # kernel never materializes an in-kernel transpose.
    w1_t = w_fc1.T  # (C, Ch)
    w2_t = w_fc2.T  # (Ch, C)

    kernel = functools.partial(_channel_attention_kernel, inv_hw=1.0 / float(HW))

    out = pl.pallas_call(
        kernel,
        out_shape=jax.ShapeDtypeStruct((N, C), x.dtype),
        grid_spec=pltpu.PrefetchScalarGridSpec(
            num_scalar_prefetch=0,
            grid=grid,
            in_specs=[
                pl.BlockSpec((bn, C, thw), lambda i, k: (i, 0, k)),  # x stream
                pl.BlockSpec((C, Ch), lambda i, k: (0, 0)),          # fc1.T
                pl.BlockSpec((Ch, C), lambda i, k: (0, 0)),          # fc2.T
            ],
            out_specs=pl.BlockSpec((bn, C), lambda i, k: (i, 0)),
            scratch_shapes=[pltpu.VMEM((bn, C), jnp.float32)],
        ),
        compiler_params=pltpu.CompilerParams(
            dimension_semantics=("parallel", "arbitrary"),
        ),
    )(x_flat, w1_t, w2_t)

    return out.reshape(N, C, 1, 1)


def _reference(x, w_fc1, w_fc2):
    # Pure-JAX reference for verification.
    pooled = jnp.mean(x.astype(jnp.float32), axis=(2, 3))            # (N, C)
    h = jnp.maximum(pooled @ w_fc1.astype(jnp.float32).T, 0.0)       # (N, Ch)
    o = jax.nn.sigmoid(h @ w_fc2.astype(jnp.float32).T)              # (N, C)
    return o.reshape(x.shape[0], x.shape[1], 1, 1).astype(x.dtype)


if __name__ == "__main__":
    key = jax.random.PRNGKey(0)

    # Case 1: in_planes=32, ratio=16 -> hidden=2; HW=256 (single reduction step).
    N, C, H, W = 2, 32, 16, 16
    Ch = C // 16
    kx, k1, k2, key = jax.random.split(key, 4)
    x = jax.random.normal(kx, (N, C, H, W), dtype=jnp.float32)
    w_fc1 = jax.random.normal(k1, (Ch, C), dtype=jnp.float32) * 0.1
    w_fc2 = jax.random.normal(k2, (C, Ch), dtype=jnp.float32) * 0.1

    out = jax.block_until_ready(channel_attention(x, w_fc1, w_fc2))
    ref = _reference(x, w_fc1, w_fc2)
    assert out.shape == (N, C, 1, 1), out.shape
    assert jnp.allclose(out, ref, atol=1e-5, rtol=1e-5), "case1 mismatch vs reference"

    # Case 2: non-multiple-of-128 spatial (24x24=576 -> padded to 640) with a
    # tiny tile budget so the multi-step reduction + padding path is exercised.
    N2, C2, H2, W2 = 2, 32, 24, 24
    Ch2 = C2 // 16
    kx2, k12, k22, key = jax.random.split(key, 4)
    x2 = jax.random.normal(kx2, (N2, C2, H2, W2), dtype=jnp.float32)
    w_fc1_2 = jax.random.normal(k12, (Ch2, C2), dtype=jnp.float32) * 0.1
    w_fc2_2 = jax.random.normal(k22, (C2, Ch2), dtype=jnp.float32) * 0.1

    out2 = jax.block_until_ready(
        channel_attention(x2, w_fc1_2, w_fc2_2, max_tile_bytes=32 * 1024))
    ref2 = _reference(x2, w_fc1_2, w_fc2_2)
    assert out2.shape == (N2, C2, 1, 1), out2.shape
    assert jnp.allclose(out2, ref2, atol=1e-5, rtol=1e-5), "case2 mismatch vs reference"

    print("KERNEL_OK")
</pallas_src>

<mosaic_0001>
module attributes {stable_mosaic.version = 11 : i64} {
  func.func @_channel_attention_kernel(%arg0: i32, %arg1: i32, %arg2: memref<2x32x256xf32, #tpu.memory_space<vmem>>, %arg3: memref<32x2xf32, #tpu.memory_space<vmem>>, %arg4: memref<2x32xf32, #tpu.memory_space<vmem>>, %arg5: memref<2x32xf32, #tpu.memory_space<vmem>>, %arg6: memref<2x32xf32, #tpu.memory_space<vmem>>) attributes {dimension_semantics = [#tpu.dimension_semantics<parallel>, #tpu.dimension_semantics<arbitrary>], iteration_bounds = array<i64: 1, 1>, scalar_prefetch = 0 : i64, scratch_operands = 1 : i64, tpu.core_type = #tpu.core_type<tc>, window_params = [{transform_indices = @transform_0, window_bounds = array<i64: 2, 32, 256>}, {pipeline_mode = #tpu.pipeline_mode<synchronous>, transform_indices = @transform_1, window_bounds = array<i64: 32, 2>}, {pipeline_mode = #tpu.pipeline_mode<synchronous>, transform_indices = @transform_2, window_bounds = array<i64: 2, 32>}, {transform_indices = @transform_3, window_bounds = array<i64: 2, 32>}]} {
    %c0_i32 = arith.constant 0 : i32
    %0 = arith.cmpi eq, %arg1, %c0_i32 : i32
    %1 = arith.extui %0 : i1 to i32
    %c0_i32_0 = arith.constant 0 : i32
    %2 = arith.cmpi ne, %1, %c0_i32_0 : i32
    scf.if %2 {
      %cst_9 = arith.constant 0.000000e+00 : f32
      %11 = vector.broadcast %cst_9 : f32 to vector<2x32xf32>
      %c0_10 = arith.constant 0 : index
      %c0_11 = arith.constant 0 : index
      %12 = vector.load %arg6[%c0_10, %c0_11] : memref<2x32xf32, #tpu.memory_space<vmem>>, vector<2x32xf32>
      tpu.vector_store %arg6[%c0_10, %c0_11], %11 {strides = array<i32>} : memref<2x32xf32, #tpu.memory_space<vmem>>, vector<2x32xf32>,
    } else {
    }
    %c0 = arith.constant 0 : index
    %c0_1 = arith.constant 0 : index
    %3 = vector.load %arg6[%c0, %c0_1] : memref<2x32xf32, #tpu.memory_space<vmem>>, vector<2x32xf32>
    %c0_2 = arith.constant 0 : index
    %c0_3 = arith.constant 0 : index
    %c0_4 = arith.constant 0 : index
    %4 = vector.load %arg2[%c0_2, %c0_3, %c0_4] : memref<2x32x256xf32, #tpu.memory_space<vmem>>, vector<2x32x256xf32>
    %cst = arith.constant dense<0.000000e+00> : vector<2x32xf32>
    %5 = vector.multi_reduction <add>, %4, %cst [2] : vector<2x32x256xf32> to vector<2x32xf32>
    %6 = arith.addf %3, %5 : vector<2x32xf32>
    %c0_5 = arith.constant 0 : index
    %c0_6 = arith.constant 0 : index
    %7 = vector.load %arg6[%c0_5, %c0_6] : memref<2x32xf32, #tpu.memory_space<vmem>>, vector<2x32xf32>
    tpu.vector_store %arg6[%c0_5, %c0_6], %6 {strides = array<i32>} : memref<2x32xf32, #tpu.memory_space<vmem>>, vector<2x32xf32>,
    %c0_i32_7 = arith.constant 0 : i32
    %8 = arith.cmpi eq, %arg1, %c0_i32_7 : i32
    %9 = arith.extui %8 : i1 to i32
    %c0_i32_8 = arith.constant 0 : i32
    %10 = arith.cmpi ne, %9, %c0_i32_8 : i32
    scf.if %10 {
      %c0_9 = arith.constant 0 : index
      %c0_10 = arith.constant 0 : index
      %11 = vector.load %arg6[%c0_9, %c0_10] : memref<2x32xf32, #tpu.memory_space<vmem>>, vector<2x32xf32>
      %cst_11 = arith.constant 3.906250e-03 : f32
      %12 = vector.broadcast %cst_11 : f32 to vector<2x32xf32>
      %13 = arith.mulf %11, %12 : vector<2x32xf32>
      %c0_12 = arith.constant 0 : index
      %c0_13 = arith.constant 0 : index
      %14 = vector.load %arg3[%c0_12, %c0_13] : memref<32x2xf32, #tpu.memory_space<vmem>>, vector<32x2xf32>
      %cst_14 = arith.constant dense<0.000000e+00> : vector<2x2xf32>
      %15 = tpu.matmul %13, %14, %cst_14 {dimension_numbers = #tpu.dot_dimension_numbers<[1], [0], [0], [1], [0, 0, 1, 1], [], []>} : vector<2x32xf32>, vector<32x2xf32>, vector<2x2xf32> -> vector<2x2xf32>
      %cst_15 = arith.constant 0.000000e+00 : f32
      %16 = vector.broadcast %cst_15 : f32 to vector<2x2xf32>
      %17 = arith.maximumf %15, %16 : vector<2x2xf32>
      %c0_16 = arith.constant 0 : index
      %c0_17 = arith.constant 0 : index
      %18 = vector.load %arg4[%c0_16, %c0_17] : memref<2x32xf32, #tpu.memory_space<vmem>>, vector<2x32xf32>
      %cst_18 = arith.constant dense<0.000000e+00> : vector<2x32xf32>
      %19 = tpu.matmul %17, %18, %cst_18 {dimension_numbers = #tpu.dot_dimension_numbers<[1], [0], [0], [1], [0, 0, 1, 1], [], []>} : vector<2x2xf32>, vector<2x32xf32>, vector<2x32xf32> -> vector<2x32xf32>
      %20 = arith.negf %19 : vector<2x32xf32>
      %21 = math.exp %20 : vector<2x32xf32>
      %cst_19 = arith.constant 1.000000e+00 : f32
      %22 = vector.broadcast %cst_19 : f32 to vector<2x32xf32>
      %23 = arith.addf %22, %21 : vector<2x32xf32>
      %24 = arith.divf %22, %23 : vector<2x32xf32>
      %c0_20 = arith.constant 0 : index
      %c0_21 = arith.constant 0 : index
      %25 = vector.load %arg5[%c0_20, %c0_21] : memref<2x32xf32, #tpu.memory_space<vmem>>, vector<2x32xf32>
      tpu.vector_store %arg5[%c0_20, %c0_21], %24 {strides = array<i32>} : memref<2x32xf32, #tpu.memory_space<vmem>>, vector<2x32xf32>,
    } else {
    }
    return
  }
  func.func @transform_0(%arg0: i32, %arg1: i32) -> (i32, i32, i32) {
    %c0_i32 = arith.constant 0 : i32
    %c0_i32_0 = arith.constant 0 : i32
    return %arg0, %c0_i32, %arg1 : i32, i32, i32
  }
  func.func @transform_1(%arg0: i32, %arg1: i32) -> (i32, i32) {
    %c0_i32 = arith.constant 0 : i32
    %c0_i32_0 = arith.constant 0 : i32
    %c0_i32_1 = arith.constant 0 : i32
    return %c0_i32, %c0_i32_0 : i32, i32
  }
  func.func @transform_2(%arg0: i32, %arg1: i32) -> (i32, i32) {
    %c0_i32 = arith.constant 0 : i32
    %c0_i32_0 = arith.constant 0 : i32
    %c0_i32_1 = arith.constant 0 : i32
    return %c0_i32, %c0_i32_0 : i32, i32
  }
  func.func @transform_3(%arg0: i32, %arg1: i32) -> (i32, i32) {
    %c0_i32 = arith.constant 0 : i32
    %c0_i32_0 = arith.constant 0 : i32
    return %arg0, %c0_i32 : i32, i32
  }
}

</mosaic_0001>

<bundles_post_ra>
// kernel: tpu_custom_call.1
= control target key start
LH: loop header
LB: loop body
LE: loop exit
PB: predicated region body
PF: predicated region fallthrough
CT: control target
= control target key end

     0   :  { %8 = vsyncpa [#allocation4], 0  ;;  %s482_s0 = inlined_call_operand.hbm [shape: f32[2,32,256], index: 0, kind: input, shape index: {}]   ;;  %s483_s1 = inlined_call_operand.vmem [shape: f32[32,2], index: 1, kind: input, shape index: {}]   ;;  %s484_s2 = inlined_call_operand.vmem [shape: f32[2,32], index: 2, kind: input, shape index: {}]   ;;  %s485_s3 = inlined_call_operand.hbm [shape: f32[2,32], index: 3, kind: output, shape index: {}]  }
   0x1   :  { %9 = vsyncpa [#allocation5], 0  ;;  %s413_s12 = smov [#allocation3]   ;;  %s365_s16 = scalar_lea.hbm %s482_s0, 2048 }
   0x2   :  { %s15_s13 = sshll.u32 %s413_s12, 4  ;;  %p366_p0 = scmp.ne.s32.totalorder %s482_s0, %s365_s16  ;;  %s16_s13 = int_to_ptr.vmem [resolvable:$true] %s15_s13 }
   0x3   :  { %p369_p1 = scmp.lt.u32.totalorder %s365_s16, %s482_s0 }
   0x5   :  { %p371_p2 = pnand %p369_p1, %p366_p0 }
   0x7   :  { %374 = shalt.err (!%p371_p2)
}
   0x8   :  { %s375_s21 = scalar_lea.vmem %s16_s13, 2048  ;;  %p380_p4 = scmp.lt.s32.totalorder %s16_s13, %s16_s13 }
   0x9   :  { %p376_p3 = scmp.ne.s32.totalorder %s16_s13, %s375_s21  ;;  %p381_p5 = scmp.lt.s32.totalorder %s375_s21, %s375_s21 }
   0xb   :  { %p382_p6 = por %p381_p5, %p380_p4 }
   0xd   :  { %p383_p7 = pnand %p382_p6, %p376_p3 }
   0xf   :  { %386 = shalt.err (!%p383_p7)
}
  0x10   :  { %s414_s22 = smov 256   ;;  %s415_s23 = smov 16  }
  0x11   :  { %21 = dma.hbm_to_vmem [thread:$0]  %s482_s0, 2048, %s16_s13, [#allocation4], %s414_s22, %s414_s22, %s415_s23  }
  0x12   :  { %409 = dma.done.wait [#allocation4], 2048  }
  0x13   :  { %410 = vsyncadd [#allocation4], 4294965248  ;;  %v44_v0 = vld [vmem:[#allocation3 + $0x40] sm:$0xff]  ;;  %v45_v1 = vld [vmem:[#allocation3 + $0x48] sm:$0xff]  ;;  %vm33_vm0 = vcmask 254976   ;;  %v416_v24 = vmov 0.0   ;;  %v84_v32 = vlaneseq }
  0x14   :  { %v36_v2 = vld [vmem:[#allocation3] sm:$0xff]  ;;  %v64_v3 = vadd.f32 %v45_v1, %v44_v0  ;;  %v37_v4 = vld [vmem:[#allocation3 + $0x8] sm:$0xff]  ;;  %v46_v5 = vld [vmem:[#allocation3 + $0x50] sm:$0xff]  ;;  %34 = vst.msk [vmem:[#allocation2] sm:$0x3] %vm33_vm0, %v416_v24  ;;  %343 = vmatprep.subr.mxu1 %v416_v24  ;;  %v417_v28 = vmov 0.0|0.0  }
  0x15   :  { %v47_v6 = vld [vmem:[#allocation3 + $0x58] sm:$0xff]  ;;  %v52_v7 = vadd.f32 %v37_v4, %v36_v2  ;;  %v38_v8 = vld [vmem:[#allocation3 + $0x10] sm:$0xff]  ;;  %v48_v12 = vld [vmem:[#allocation3 + $0x60] sm:$0xff]  ;;  %348 = vmatprep.subr.bf16.mxu0 %v417_v28  ;;  %vm418_vm1 = vmmov 0   ;;  %v85_v33 = vand.u32 127, %v84_v32  ;;  %v87_v38 = vshrl.u32 %v84_v32, 7 }
  0x16   :  { %v39_v9 = vld [vmem:[#allocation3 + $0x18] sm:$0xff]  ;;  %65 = vadd.xlane.f32.xlu1 %v64_v3  ;;  %v67_v10 = vadd.f32 %v47_v6, %v46_v5  ;;  %v49_v13 = vld [vmem:[#allocation3 + $0x68] sm:$0xff]  ;;  %v40_v14 = vld [vmem:[#allocation3 + $0x20] sm:$0xff]  ;;  %340 = vmatprep.mubr.msk.f32.mxu0 %vm418_vm1, %v416_v24  ;;  %vm95_vm2 = vcmask 130112   ;;  %vm102_vm3 = vcmask 195712   ;;  %vm109_vm4 = vcmask 261312  }
  0x17   :  { %53 = vadd.xlane.f32.xlu0 %v52_v7  ;;  %v55_v11 = vadd.f32 %v39_v9, %v38_v8  ;;  %v41_v15 = vld [vmem:[#allocation3 + $0x28] sm:$0xff]  ;;  %v70_v16 = vadd.f32 %v49_v13, %v48_v12  ;;  %v50_v18 = vld [vmem:[#allocation3 + $0x70] sm:$0xff]  ;;  %v51_v19 = vld [vmem:[#allocation3 + $0x78] sm:$0xff]  ;;  %345 = vmatprep.mubr.msk.f32.mxu1 %vm418_vm1, %v416_v24  ;;  %v90_v36 = vadd.s32 4294967288, %v85_v33  ;;  %v97_v37 = vadd.s32 4294967280, %v85_v33  ;;  %s419_s7 = smov [#allocation6]  }
  0x18   :  { %v58_v17 = vadd.f32 %v41_v15, %v40_v14  ;;  %v42_v20 = vld [vmem:[#allocation3 + $0x30] sm:$0xff]  ;;  %v43_v21 = vld [vmem:[#allocation3 + $0x38] sm:$0xff]  ;;  %v73_v22 = vadd.f32 %v51_v19, %v50_v18  ;;  %v142_v26 = vld [vmem:[%s483_s1 + $0x8] sm:$0xff]  ;;  %v104_v42 = vadd.s32 4294967272, %v85_v33  ;;  %v88_v44 = vsub.s32 %v85_v33, %v87_v38  ;;  %s312_s8 = sshll.u32 %s419_s7, 4  ;;  %s313_s8 = int_to_ptr.vmem [resolvable:$true] %s312_s8 }
  0x19   :  { %v61_v23 = vadd.f32 %v43_v21, %v42_v20  ;;  %v141_v25 = vld [vmem:[%s483_s1] sm:$0xff]  ;;  %v143_v27 = vld [vmem:[%s483_s1 + $0x10] sm:$0xff]  ;;  %v144_v30 = vld [vmem:[%s483_s1 + $0x18] sm:$0xff]  ;;  %v93_v40 = vsub.s32 %v90_v36, %v87_v38  ;;  %v100_v43 = vsub.s32 %v97_v37, %v87_v38  ;;  %vm130_vm5 = vcmask 1041409   ;;  %p392_p9 = scmp.lt.s32.totalorder %s313_s8, %s313_s8 }
  0x1a   :  { %68 = vadd.xlane.f32.xlu1 %v67_v10  ;;  %v349_v29 = vpack.c.bf16 %v142_v26, %v141_v25  ;;  %v352_v31 = vpack.c.bf16 %v144_v30, %v143_v27  ;;  %v107_v48 = vsub.s32 %v104_v42, %v87_v38  ;;  %vm145_vm6 = vcmask 261120   ;;  %v220_v5 = vld [vmem:[%s484_s2] sm:$0x3]  ;;  %s387_s2 = scalar_lea.vmem %s313_s8, 32 }
  0x1b   :  { %56 = vadd.xlane.f32.xlu0 %v55_v11  ;;  %v35_v63 = vld [vmem:[#allocation2] sm:$0x3]  ;;  %vm225_vm7 = vcmask 1041408   ;;  %vm221_vm8 = vcmask 15360   ;;  %p388_p8 = scmp.ne.s32.totalorder %s313_s8, %s387_s2  ;;  %p393_p10 = scmp.lt.s32.totalorder %s387_s2, %s387_s2 }
  0x1c   :  { %350 = vmatpush3.bf16.msra.mxu0 %v349_v29  ;;  %344 = vmatpush3.msk.msra.mxu1 %vm225_vm7, %v220_v5 }
  0x1d   :  { %351 = vmatprep.subr.bf16.mxu0 %v417_v28  ;;  %p394_p11 = por %p393_p10, %p392_p9 }
  0x1e   :  { %71 = vadd.xlane.f32.xlu1 %v70_v16 }
  0x1f   :  { %59 = vadd.xlane.f32.xlu0 %v58_v17  ;;  %p395_p12 = pnand %p394_p11, %p388_p8 }
  0x20   :  { %353 = vmatpush3.bf16.msra.mxu0 %v352_v31 }
  0x22   :  { %74 = vadd.xlane.f32.xlu1 %v73_v22 }
  0x23   :  { %62 = vadd.xlane.f32.xlu0 %v61_v23 }
  0xa3   :  { %v66_v34 = vpop.xlane.xlu1 %65 }
  0xa4   :  { %v54_v35 = vpop.xlane.xlu0 %53  ;;  %v114_v51 = vrot.slane %v66_v34, %v88_v44 }
  0xa5   :  { %v89_v53 = vrot.slane %v54_v35, %v88_v44 }
  0xa7   :  { %v69_v39 = vpop.xlane.xlu1 %68 }
  0xa8   :  { %v57_v41 = vpop.xlane.xlu0 %56  ;;  %v118_v46 = vrot.slane %v69_v39, %v93_v40 }
  0xa9   :  { %v94_v49 = vrot.slane %v57_v41, %v93_v40 }
  0xaa   :  { %v119_v55 = vsel %vm95_vm2, %v118_v46, %v114_v51 }
  0xab   :  { %v72_v45 = vpop.xlane.xlu1 %71  ;;  %v96_v58 = vsel %vm95_vm2, %v94_v49, %v89_v53 }
  0xac   :  { %v60_v47 = vpop.xlane.xlu0 %59  ;;  %v123_v50 = vrot.slane %v72_v45, %v100_v43 }
  0xad   :  { %v101_v52 = vrot.slane %v60_v47, %v100_v43 }
  0xae   :  { %v124_v59 = vsel %vm102_vm3, %v123_v50, %v119_v55 }
  0xaf   :  { %v75_v54 = vpop.xlane.xlu1 %74  ;;  %v103_v61 = vsel %vm102_vm3, %v101_v52, %v96_v58 }
  0xb0   :  { %v128_v56 = vrot.slane %v75_v54, %v107_v48  ;;  %v63_v57 = vpop.xlane.xlu0 %62 }
  0xb1   :  { %v108_v60 = vrot.slane %v63_v57, %v107_v48 }
  0xb2   :  { %v129_v62 = vsel %vm109_vm4, %v128_v56, %v124_v59 }
  0xb3   :  { %v110_v0 = vsel %vm109_vm4, %v108_v60, %v103_v61 }
  0xb4   :  { %v131_v1 = vsel %vm130_vm5, %v129_v62, %v110_v0 }
  0xb5   :  { %v133_v2 = vadd.f32 %v131_v1, %v35_v63 }
  0xb7   :  { %135 = vst.msk [vmem:[#allocation2] sm:$0x3] %vm33_vm0, %v133_v2 }
  0xbe   :  { %v139_v3 = vld [vmem:[#allocation2] sm:$0x3] }
  0xbf   :  { %v140_v4 = vmul.f32 0.00390625, %v139_v3 }
  0xc1   :  { %341 = vmatmul.mubr.msk.f32.vlgmr.msra.gmra.mrb[0].mxu0 %vm145_vm6, %v140_v4 }
 0x194   :  { %v215_v6 = vpop.f32.mrb[0].mxu0 }
 0x195   :  { %v219_v7 = vmax.f32 %v215_v6, 0.0  ;;  %v342_v8 = vpop.f32.mrb[1].mxu0 }
 0x197   :  { %346 = vmatmul.mubr.msk.f32.vlgmr.msra.gmra.mrb[0].mxu1 %vm221_vm8, %v219_v7 }
 0x26a   :  { %v295_v9 = vpop.f32.mrb[0].mxu1 }
 0x26b   :  { %v324_v10 = vmul.f32 -1.442695, %v295_v9  ;;  %v347_v11 = vpop.f32.mrb[1].mxu1 }
 0x26d   :  { %361 = vpow2.f32 %v324_v10 }
 0x277   :  { %v362_v12 = vpop.eup %361 }
 0x278   :  { %v302_v13 = vadd.f32 1.0, %v362_v12 }
 0x27a   :  { %363 = vrcp.f32 %v302_v13 }
 0x284   :  { %v364_v14 = vpop.eup %363 }
 0x285   :  { %305 = vst.msk [vmem:[#allocation6] sm:$0x3] %vm33_vm0, %v364_v14 }
 0x286   :  { %398 = shalt.err (!%p395_p12)
}
 0x287   :  { %s399_s11 = scalar_lea.hbm %s485_s3, 32 }
 0x288   :  { %p400_p13 = scmp.ne.s32.totalorder %s485_s3, %s399_s11  ;;  %p403_p0 = scmp.lt.u32.totalorder %s399_s11, %s485_s3 }
 0x28a   :  { %p405_p1 = pnand %p403_p0, %p400_p13 }
 0x28c   :  { %408 = shalt.err (!%p405_p1)
}
 0x28d   :  { %315 = dma.vmem_to_hbm [thread:$0]  %s313_s8, 32, %s485_s3, [#allocation5]  }
 0x28e   :  { %411 = dma.done.wait [#allocation5], 32  }
 0x28f   :  { %412 = vsyncadd [#allocation5], 4294967264 }
 0x290   :  { %319 = vsyncpa [#allocation4], 1 }
 0x291   :  { %320 = vsyncpa [#allocation5], 1 }

</bundles_post_ra>
